<compile_context>
chip_gen: v6e
topology: v6e:2x2x1
jax: 0.10.0
libtpu: 0.0.40
codegen_flags: <defaults>
</compile_context>

<pallas_src>
import math
import functools

import jax
import jax.numpy as jnp
from jax.experimental import pallas as pl
from jax.experimental.pallas import tpu as pltpu


def _self_attention_kernel(x_ref, wkqv_ref, bkqv_ref, wp_ref, bp_ref, o_ref,
                           *, n_head, masked):
    # x_ref: (3, L, D)  [key | query | value] stacked on the leading axis (batch dim squeezed)
    # wkqv_ref: (3, D, D)   bkqv_ref: (3, 1, D)   wp_ref: (D, D)   bp_ref: (1, D)
    # o_ref: (L, D)
    L, D = o_ref.shape
    hd = D // n_head
    scale = 1.0 / math.sqrt(hd)

    x = x_ref[...].astype(jnp.float32)                       # (3, L, D)
    w = wkqv_ref[...].astype(jnp.float32)                    # (3, D, D)
    b = bkqv_ref[...].astype(jnp.float32)                    # (3, 1, D)

    # Fused K/Q/V projections: one batched MXU matmul over the stacked leading axis.
    kqv = jnp.einsum('sld,sde->sle', x, w,
                     preferred_element_type=jnp.float32) + b  # (3, L, D)

    # Leading-axis (sublane-major) splits are layout-free; head split happens on the last dim
    # once, feeding head-batched einsums (no per-head lane slices).
    k = kqv[0].reshape(L, n_head, hd)                         # (L, H, hd)
    q = kqv[1].reshape(L, n_head, hd)
    v = kqv[2].reshape(L, n_head, hd)

    att = jnp.einsum('lhd,mhd->hlm', q, k,
                     preferred_element_type=jnp.float32) * scale  # (H, L, L)

    if masked:
        # Causal mask built once (diagonal always unmasked, so the -inf path is NaN-safe).
        row = jax.lax.broadcasted_iota(jnp.int32, (L, L), 0)
        col = jax.lax.broadcasted_iota(jnp.int32, (L, L), 1)
        neg_bias = jnp.where(col <= row, 0.0, -jnp.inf).astype(jnp.float32)
        att = att + neg_bias[None, :, :]

    # Numerically-stable softmax over the key axis (f32 on the VPU/EUP).
    att = att - jnp.max(att, axis=-1, keepdims=True)
    p = jnp.exp(att)
    att = p * pl.reciprocal(jnp.sum(p, axis=-1, keepdims=True), approx=True)

    y = jnp.einsum('hlm,mhd->lhd', att, v,
                   preferred_element_type=jnp.float32)        # (L, H, hd)

    out = jnp.dot(y.reshape(L, D), wp_ref[...].astype(jnp.float32),
                  preferred_element_type=jnp.float32) + bp_ref[0].astype(jnp.float32)
    o_ref[...] = out.astype(o_ref.dtype)


def prepare_attention_params(params):
    """Hoisted, once-per-model parameter packing (NOT per forward call).

    params = (wk, bk, wq, bq, wv, bv, wp, bp); weights (D, D) laid out (in, out).
    """
    wk, bk, wq, bq, wv, bv, wp, bp = params
    D = wp.shape[0]
    w_kqv = jnp.stack([wk, wq, wv])                  # (3, D, D)  leading-axis stack
    b_kqv = jnp.stack([bk, bq, bv]).reshape(3, 1, D) # (3, 1, D)
    bp2 = bp.reshape(1, D)                           # (1, D)
    return w_kqv, b_kqv, wp, bp2


def self_attention(key_x, value_x, query_x, prepared_params, *, n_head, masked=False):
    """prepared_params = prepare_attention_params(raw_params)."""
    B, L, D = query_x.shape
    w_kqv, b_kqv, wp, bp2 = prepared_params

    # Leading-axis stack of the three input streams (no lane-axis relayout).
    x_stacked = jnp.stack([key_x, query_x, value_x])          # (3, B, L, D)

    kernel = functools.partial(_self_attention_kernel, n_head=n_head, masked=masked)

    out = pl.pallas_call(
        kernel,
        out_shape=jax.ShapeDtypeStruct((B, L, D), query_x.dtype),
        grid_spec=pltpu.PrefetchScalarGridSpec(
            num_scalar_prefetch=0,
            grid=(B,),  # one batch element per step; "parallel" -> split across v7x's 2 TCs
            in_specs=[
                pl.BlockSpec((3, None, L, D), lambda b: (0, b, 0, 0)),  # stacked k/q/v inputs
                pl.BlockSpec((3, D, D), lambda b: (0, 0, 0)),           # stacked QKV weights (resident)
                pl.BlockSpec((3, 1, D), lambda b: (0, 0, 0)),           # stacked QKV biases (resident)
                pl.BlockSpec((D, D), lambda b: (0, 0)),                 # output proj weight (resident)
                pl.BlockSpec((1, D), lambda b: (0, 0)),                 # output proj bias (resident)
            ],
            out_specs=pl.BlockSpec((None, L, D), lambda b: (b, 0, 0)),
        ),
        compiler_params=pltpu.CompilerParams(dimension_semantics=("parallel",)),
    )(x_stacked, w_kqv, b_kqv, wp, bp2)

    return out


def _reference(key_x, value_x, query_x, params, *, n_head, masked=False):
    """Pure-JAX reference mirroring the PyTorch module exactly."""
    B, L, D = query_x.shape
    hd = D // n_head
    wk, bk, wq, bq, wv, bv, wp, bp = params

    def heads(x, w, b):
        y = x @ w + b                                             # (B, L, D)
        return y.reshape(B, L, n_head, hd).transpose(0, 2, 1, 3)  # (B, H, L, hd)

    k = heads(key_x, wk, bk)
    q = heads(query_x, wq, bq)
    v = heads(value_x, wv, bv)
    att = (q @ jnp.swapaxes(k, -2, -1)) * (1.0 / math.sqrt(hd))   # (B, H, L, L)
    if masked:
        tri = jnp.tril(jnp.ones((L, L)))
        att = jnp.where(tri == 0, -jnp.inf, att)
    att = jax.nn.softmax(att, axis=-1)
    y = att @ v                                                   # (B, H, L, hd)
    y = y.transpose(0, 2, 1, 3).reshape(B, L, D)
    return y @ wp + bp


if __name__ == "__main__":
    # Module config: n_embd=32, n_head=4, n_agent=7 (so L = n_agent + 1 = 8), masked=False.
    B, L, D, n_head = 2, 8, 32, 4
    masked = False

    key0 = jax.random.PRNGKey(0)
    kq, kk, kv, kwk, kwq, kwv, kwp = jax.random.split(key0, 7)

    query_x = jax.random.normal(kq, (B, L, D), dtype=jnp.float32)
    key_x = jax.random.normal(kk, (B, L, D), dtype=jnp.float32)
    value_x = jax.random.normal(kv, (B, L, D), dtype=jnp.float32)

    # Deterministic parameter init (stands in for U.init_(nn.Linear(...))):
    # small-gain normal weights, zero biases. Weights are (D_in, D_out).
    def init_w(k):
        return 0.1 * jax.random.normal(k, (D, D), dtype=jnp.float32)

    params = (init_w(kwk), jnp.zeros((D,), jnp.float32),
              init_w(kwq), jnp.zeros((D,), jnp.float32),
              init_w(kwv), jnp.zeros((D,), jnp.float32),
              init_w(kwp), jnp.zeros((D,), jnp.float32))

    # Parameter packing done once at setup time (hoisted out of the per-call path).
    prepared = prepare_attention_params(params)

    out = self_attention(key_x, value_x, query_x, prepared, n_head=n_head, masked=masked)
    out = jax.block_until_ready(out)

    ref = _reference(key_x, value_x, query_x, params, n_head=n_head, masked=masked)
    assert out.shape == (B, L, D)
    # Tolerance loosened slightly vs. 1e-4 because the softmax denominator uses the EUP
    # approximate reciprocal (pl.reciprocal(..., approx=True)).
    assert jnp.allclose(out, ref, atol=2e-3, rtol=2e-3), "mismatch vs. reference"

    print("KERNEL_OK")
</pallas_src>

<mosaic_0001>
module attributes {stable_mosaic.version = 11 : i64} {
  func.func @_self_attention_kernel(%arg0: i32, %arg1: memref<3x1x8x32xf32, #tpu.memory_space<vmem>>, %arg2: memref<3x32x32xf32, #tpu.memory_space<vmem>>, %arg3: memref<3x1x32xf32, #tpu.memory_space<vmem>>, %arg4: memref<32x32xf32, #tpu.memory_space<vmem>>, %arg5: memref<1x32xf32, #tpu.memory_space<vmem>>, %arg6: memref<1x8x32xf32, #tpu.memory_space<vmem>>) attributes {dimension_semantics = [#tpu.dimension_semantics<parallel>], iteration_bounds = array<i64: 2>, scalar_prefetch = 0 : i64, scratch_operands = 0 : i64, tpu.core_type = #tpu.core_type<tc>, window_params = [{transform_indices = @transform_0, window_bounds = array<i64: 3, 1, 8, 32>}, {pipeline_mode = #tpu.pipeline_mode<synchronous>, transform_indices = @transform_1, window_bounds = array<i64: 3, 32, 32>}, {pipeline_mode = #tpu.pipeline_mode<synchronous>, transform_indices = @transform_2, window_bounds = array<i64: 3, 1, 32>}, {pipeline_mode = #tpu.pipeline_mode<synchronous>, transform_indices = @transform_3, window_bounds = array<i64: 32, 32>}, {pipeline_mode = #tpu.pipeline_mode<synchronous>, transform_indices = @transform_4, window_bounds = array<i64: 1, 32>}, {transform_indices = @transform_5, window_bounds = array<i64: 1, 8, 32>}]} {
    %c0 = arith.constant 0 : index
    %c0_0 = arith.constant 0 : index
    %c0_1 = arith.constant 0 : index
    %c0_2 = arith.constant 0 : index
    %0 = vector.load %arg1[%c0, %c0_0, %c0_1, %c0_2] : memref<3x1x8x32xf32, #tpu.memory_space<vmem>>, vector<3x1x8x32xf32>
    %1 = vector.shape_cast %0 : vector<3x1x8x32xf32> to vector<3x8x32xf32>
    %c0_3 = arith.constant 0 : index
    %c0_4 = arith.constant 0 : index
    %c0_5 = arith.constant 0 : index
    %2 = vector.load %arg2[%c0_3, %c0_4, %c0_5] : memref<3x32x32xf32, #tpu.memory_space<vmem>>, vector<3x32x32xf32>
    %c0_6 = arith.constant 0 : index
    %c0_7 = arith.constant 0 : index
    %c0_8 = arith.constant 0 : index
    %3 = vector.load %arg3[%c0_6, %c0_7, %c0_8] : memref<3x1x32xf32, #tpu.memory_space<vmem>>, vector<3x1x32xf32>
    "tpu.trace_start"() <{level = 10 : i32, message = "sld,sde->sle"}> : () -> ()
    %cst = arith.constant dense<0.000000e+00> : vector<3x8x32xf32>
    %4 = tpu.matmul %1, %2, %cst {dimension_numbers = #tpu.dot_dimension_numbers<[2], [1], [1], [2], [0, 0, 0, 1, 1, 2], [0], [0]>} : vector<3x8x32xf32>, vector<3x32x32xf32>, vector<3x8x32xf32> -> vector<3x8x32xf32>
    "tpu.trace_stop"() : () -> ()
    %5 = vector.broadcast %3 : vector<3x1x32xf32> to vector<3x8x32xf32>
    %6 = arith.addf %4, %5 : vector<3x8x32xf32>
    %7 = vector.extract_strided_slice %6 {offsets = [0, 0, 0], sizes = [1, 8, 32], strides = [1, 1, 1]} : vector<3x8x32xf32> to vector<1x8x32xf32>
    %8 = vector.shape_cast %7 : vector<1x8x32xf32> to vector<8x32xf32>
    %9 = vector.shape_cast %8 : vector<8x32xf32> to vector<8x4x8xf32>
    %10 = vector.extract_strided_slice %6 {offsets = [1, 0, 0], sizes = [1, 8, 32], strides = [1, 1, 1]} : vector<3x8x32xf32> to vector<1x8x32xf32>
    %11 = vector.shape_cast %10 : vector<1x8x32xf32> to vector<8x32xf32>
    %12 = vector.shape_cast %11 : vector<8x32xf32> to vector<8x4x8xf32>
    %13 = vector.extract_strided_slice %6 {offsets = [2, 0, 0], sizes = [1, 8, 32], strides = [1, 1, 1]} : vector<3x8x32xf32> to vector<1x8x32xf32>
    %14 = vector.shape_cast %13 : vector<1x8x32xf32> to vector<8x32xf32>
    %15 = vector.shape_cast %14 : vector<8x32xf32> to vector<8x4x8xf32>
    "tpu.trace_start"() <{level = 10 : i32, message = "lhd,mhd->hlm"}> : () -> ()
    %cst_9 = arith.constant dense<0.000000e+00> : vector<4x8x8xf32>
    %16 = tpu.matmul %12, %9, %cst_9 {dimension_numbers = #tpu.dot_dimension_numbers<[2], [2], [0], [0], [0, 1, 0, 0, 1, 0], [1], [1]>} : vector<8x4x8xf32>, vector<8x4x8xf32>, vector<4x8x8xf32> -> vector<4x8x8xf32>
    "tpu.trace_stop"() : () -> ()
    %cst_10 = arith.constant 0.353553385 : f32
    %17 = vector.broadcast %cst_10 : f32 to vector<4x8x8xf32>
    %18 = arith.mulf %16, %17 : vector<4x8x8xf32>
    %cst_11 = arith.constant dense<0xFF800000> : vector<4x8xf32>
    %19 = vector.multi_reduction <maximumf>, %18, %cst_11 [2] : vector<4x8x8xf32> to vector<4x8xf32>
    %20 = vector.shape_cast %19 : vector<4x8xf32> to vector<4x8x1xf32>
    %21 = vector.broadcast %20 : vector<4x8x1xf32> to vector<4x8x8xf32>
    %22 = arith.subf %18, %21 : vector<4x8x8xf32>
    %23 = math.exp %22 : vector<4x8x8xf32>
    %cst_12 = arith.constant dense<0.000000e+00> : vector<4x8xf32>
    %24 = vector.multi_reduction <add>, %23, %cst_12 [2] : vector<4x8x8xf32> to vector<4x8xf32>
    %25 = vector.shape_cast %24 : vector<4x8xf32> to vector<4x8x1xf32>
    %26 = tpu.reciprocal %25 {approx = true} : vector<4x8x1xf32> -> vector<4x8x1xf32>
    %27 = vector.broadcast %26 : vector<4x8x1xf32> to vector<4x8x8xf32>
    %28 = arith.mulf %23, %27 : vector<4x8x8xf32>
    "tpu.trace_start"() <{level = 10 : i32, message = "hlm,mhd->lhd"}> : () -> ()
    %cst_13 = arith.constant dense<0.000000e+00> : vector<4x8x8xf32>
    %29 = tpu.matmul %15, %28, %cst_13 {dimension_numbers = #tpu.dot_dimension_numbers<[0], [2], [2], [1], [0, 1, 0, 2, 1, 1], [1], [0]>} : vector<8x4x8xf32>, vector<4x8x8xf32>, vector<4x8x8xf32> -> vector<4x8x8xf32>
    %30 = tpu.transpose %29, [2, 0, 1] : vector<4x8x8xf32> -> vector<8x4x8xf32>
    "tpu.trace_stop"() : () -> ()
    %31 = vector.shape_cast %30 : vector<8x4x8xf32> to vector<8x32xf32>
    %c0_14 = arith.constant 0 : index
    %c0_15 = arith.constant 0 : index
    %32 = vector.load %arg4[%c0_14, %c0_15] : memref<32x32xf32, #tpu.memory_space<vmem>>, vector<32x32xf32>
    %cst_16 = arith.constant dense<0.000000e+00> : vector<8x32xf32>
    %33 = tpu.matmul %31, %32, %cst_16 {dimension_numbers = #tpu.dot_dimension_numbers<[1], [0], [0], [1], [0, 0, 1, 1], [], []>} : vector<8x32xf32>, vector<32x32xf32>, vector<8x32xf32> -> vector<8x32xf32>
    %c0_17 = arith.constant 0 : index
    %c0_18 = arith.constant 0 : index
    %34 = vector.load %arg5[%c0_17, %c0_18] : memref<1x32xf32, #tpu.memory_space<vmem>>, vector<1x32xf32>
    %35 = vector.shape_cast %34 : vector<1x32xf32> to vector<32xf32>
    %36 = vector.shape_cast %35 : vector<32xf32> to vector<1x32xf32>
    %37 = vector.broadcast %36 : vector<1x32xf32> to vector<8x32xf32>
    %38 = arith.addf %33, %37 : vector<8x32xf32>
    %c0_19 = arith.constant 0 : index
    %c0_20 = arith.constant 0 : index
    %c0_21 = arith.constant 0 : index
    %39 = vector.load %arg6[%c0_19, %c0_20, %c0_21] : memref<1x8x32xf32, #tpu.memory_space<vmem>>, vector<1x8x32xf32>
    %40 = vector.shape_cast %39 : vector<1x8x32xf32> to vector<8x32xf32>
    %41 = vector.shape_cast %38 : vector<8x32xf32> to vector<1x8x32xf32>
    tpu.vector_store %arg6[%c0_19, %c0_20, %c0_21], %41 {strides = array<i32>} : memref<1x8x32xf32, #tpu.memory_space<vmem>>, vector<1x8x32xf32>,
    return
  }
  func.func @transform_0(%arg0: i32) -> (i32, i32, i32, i32) {
    %c0_i32 = arith.constant 0 : i32
    %c0_i32_0 = arith.constant 0 : i32
    %c0_i32_1 = arith.constant 0 : i32
    %c0_i32_2 = arith.constant 0 : i32
    return %c0_i32, %arg0, %c0_i32_0, %c0_i32_1 : i32, i32, i32, i32
  }
  func.func @transform_1(%arg0: i32) -> (i32, i32, i32) {
    %c0_i32 = arith.constant 0 : i32
    %c0_i32_0 = arith.constant 0 : i32
    %c0_i32_1 = arith.constant 0 : i32
    %c0_i32_2 = arith.constant 0 : i32
    return %c0_i32, %c0_i32_0, %c0_i32_1 : i32, i32, i32
  }
  func.func @transform_2(%arg0: i32) -> (i32, i32, i32) {
    %c0_i32 = arith.constant 0 : i32
    %c0_i32_0 = arith.constant 0 : i32
    %c0_i32_1 = arith.constant 0 : i32
    %c0_i32_2 = arith.constant 0 : i32
    return %c0_i32, %c0_i32_0, %c0_i32_1 : i32, i32, i32
  }
  func.func @transform_3(%arg0: i32) -> (i32, i32) {
    %c0_i32 = arith.constant 0 : i32
    %c0_i32_0 = arith.constant 0 : i32
    %c0_i32_1 = arith.constant 0 : i32
    return %c0_i32, %c0_i32_0 : i32, i32
  }
  func.func @transform_4(%arg0: i32) -> (i32, i32) {
    %c0_i32 = arith.constant 0 : i32
    %c0_i32_0 = arith.constant 0 : i32
    %c0_i32_1 = arith.constant 0 : i32
    return %c0_i32, %c0_i32_0 : i32, i32
  }
  func.func @transform_5(%arg0: i32) -> (i32, i32, i32) {
    %c0_i32 = arith.constant 0 : i32
    %c0_i32_0 = arith.constant 0 : i32
    %c0_i32_1 = arith.constant 0 : i32
    return %arg0, %c0_i32, %c0_i32_0 : i32, i32, i32
  }
}

</mosaic_0001>

<bundles_post_ra>
// kernel: tpu_custom_call.1
= control target key start
LH: loop header
LB: loop body
LE: loop exit
PB: predicated region body
PF: predicated region fallthrough
CT: control target
= control target key end

     0   :  { %10 = vsyncpa [#allocation3], 0  ;;  %s2666_s0 = inlined_call_operand.hbm [shape: f32[3,2,8,32], index: 0, kind: input, shape index: {}]   ;;  %s2667_s1 = inlined_call_operand.hbm [shape: f32[3,32,32], index: 1, kind: input, shape index: {}]   ;;  %s2668_s2 = inlined_call_operand.vmem [shape: f32[3,1,32], index: 2, kind: input, shape index: {}]   ;;  %s2669_s3 = inlined_call_operand.hbm [shape: f32[32,32], index: 3, kind: input, shape index: {}]   ;;  %s2670_s4 = inlined_call_operand.vmem [shape: f32[1,32], index: 4, kind: input, shape index: {}]   ;;  %s2671_s5 = inlined_call_operand.hbm [shape: f32[2,8,32], index: 5, kind: output, shape index: {}]  }
   0x1   :  { %12 = vsyncpa [#allocation3 + $0x1], 0 }
   0x2   :  { %13 = vsyncpa [#allocation6], 0 }
   0x3   :  { %14 = vsyncpa [#allocation4], 0 }
   0x4   :  { %16 = vsyncpa [#allocation4 + $0x1], 0  ;;  %s2371_s18 = smov 0   ;;  %s2373_s19 = smov 0  }
   0x5   :  { %s2375_s20 = smov 0   ;;  %s2377_s21 = smov 0  }
   0x6 LB: > { %s2392_s22 = sadd.s32 4294967295, %s2322_s21   ;;  %s1920_s23 = sadd.s32 4294967294, %s2322_s21   ;;  %s2322_s21 = sphi %s2377_s21, %s2695_s21   ;;  %s2318_s20 = sphi %s2375_s20, %s2694_s20   ;;  %s2314_s19 = sphi %s2373_s19, %s2693_s19   ;;  %s2310_s18 = sphi %s2371_s18, %s2692_s18  }
   0x7   : > { %s2396_s24 = sadd.s32 1, %s2322_s21   ;;  %s29_s25 = sadd.s32 1, %s2318_s20 }
   0x8   : > { %s26_s26 = ssub.s32 %s2322_s21, %s2396_s24  ;;  %p36_p0 = scmp.ne.s32.totalorder %s2318_s20, %s2314_s19 }
   0x9   : > { %p27_p1 = scmp.eq.s32.totalorder %s26_s26, 0  ;;  %p37_p2 = scmp.eq.s32.totalorder %s2322_s21, 0 }
   0xa   : > { %p42_p3 = scmp.ne.s32.totalorder %s2314_s19, %s2310_s18  ;;  %p2673_p4 = scmp.eq.s32.totalorder %s2392_s22, 0 }
   0xb   : > { %s2408_s27 = scalar_select %p27_p1, %s2318_s20, %s29_s25  }
   0xc   : > { %p2410_p5 = por %p37_p2, %p36_p0  ;;  %p2416_p6 = por %p2673_p4, %p42_p3 }
   0xd   : > { %p150_p7 = scmp.eq.s32.totalorder %s2392_s22, 1  ;;  %p156_p8 = scmp.eq.s32.totalorder %s1920_s23, 1 }
   0xe   : > { %s2678_s29 = scalar_select %p2416_p6, 1, 0 }
   0xf   : > { %p1921_p9 = scmp.ge.s32.totalorder %s2322_s21, 1  ;;  %p163_p10 = scmp.lt.s32.totalorder %s2322_s21, 3 }
  0x10   : > { %p2423_p11 = por %p150_p7, %p36_p0  ;;  %p2427_p12 = por %p156_p8, %p42_p3 }
  0x11   : > { %p2431_p13 = pnand %p1921_p9, %p163_p10  ;;  %s2324_s8 = smov [#allocation5]  }
  0x12   : > { %s2679_s30 = scalar_select %p2423_p11, 1, 0 }
  0x13   : > { %s2680_s6 = scalar_select %p2427_p12, 1, 0 }
  0x14   : > { %s2681_s7 = scalar_select %p2431_p13, 1, 0 }
  0x15   : > { %p2090_p1 = pneg %p2431_p13  ;;  %s175_s9 = sshll.u32 %s2324_s8, 4  ;;  %s176_s9 = int_to_ptr.vmem [resolvable:$true] %s175_s9 }
  0x16   : > { %p2107_p3 = scmp.lt.s32.totalorder %s2322_s21, 2  ;;  %s2325_s11 = smov [#allocation7]  }
  0x17   : > { %p2439_p2 = pnand %p2090_p1, %p2673_p4  ;;  %s191_s12 = sshll.u32 %s2325_s11, 4  ;;  %s192_s12 = int_to_ptr.vmem [resolvable:$true] %s191_s12 }
  0x18   : > { %s2185_s13 = scalar_lea.vmem %s176_s9, 1536  ;;  %p2193_p12 = scmp.lt.s32.totalorder %s176_s9, %s176_s9 }
  0x19   : > { %p2176_p7 = pneg %p2439_p2  ;;  %p2186_p8 = scmp.ne.s32.totalorder %s176_s9, %s2185_s13 }
  0x1a   : > { %p2194_p11 = scmp.lt.s32.totalorder %s2185_s13, %s2185_s13 }
  0x1b   : > { %p2188_p9 = pnand %p2186_p8, %p2176_p7 }
  0x1c   : > { %p2195_p1 = por %p2194_p11, %p2193_p12 }
  0x1d   : > { %p2189_p10 = pneg %p2188_p9 }
  0x1f   : > { %p2196_p4 = pnand %p2195_p1, %p2189_p10 }
  0x21   : > { %2199 = shalt.err (!%p2196_p4)
}
  0x22   : > { %s2674_s14 = smov 128   ;;  %s2327_s15 = smov 8  }
  0x23   : > { %2093 = dma.hbm_to_vmem [thread:$0]  (!%p2439_p2), %s2667_s1, 1536, %s176_s9, [#allocation6], %s2674_s14, %s2674_s14, %s2327_s15  }
  0x24   : > { %p2462_p8 = pnand %p2107_p3, %p2410_p5  ;;  %s2211_s25 = scalar_lea.vmem %s192_s12, 512 }
  0x25   : > { %p2212_p4 = scmp.ne.s32.totalorder %s192_s12, %s2211_s25  ;;  %p2219_p9 = scmp.lt.s32.totalorder %s192_s12, %s192_s12 }
  0x26   : > { %p2220_p10 = scmp.lt.s32.totalorder %s2211_s25, %s2211_s25 }
  0x27   : > { %p2214_p11 = pnand %p2212_p4, %p2176_p7 }
  0x28   : > { %p2221_p1 = por %p2220_p10, %p2219_p9 }
  0x29   : > { %p2215_p12 = pneg %p2214_p11 }
  0x2b   : > { %p2222_p0 = pnand %p2221_p1, %p2215_p12 }
  0x2d   : > { %2225 = shalt.err (!%p2222_p0)
}
  0x2e   : > { %2096 = dma.hbm_to_vmem [thread:$0]  (!%p2439_p2), %s2669_s3, 512, %s192_s12, [#allocation6], %s2674_s14, %s2674_s14, %s2327_s15  }
  0x2f   : > { %s208_s8 = sand.u32 1, %s2318_s20   ;;  %s1925_s11 = sshll.u32 %s2322_s21, 7 }
  0x30   : > { %s2076_s9 = smul.u32 24, %s208_s8  ;;  %s2482_s17 = scalar_lea.hbm %s2666_s0, %s1925_s11 }
  0x31   : > { %s2486_s26 = scalar_lea.sflag [#allocation3], %s208_s8  ;;  %s2226_s28 = scalar_lea.hbm %s2482_s17, 384 }
  0x32   : > { %s212_s10 = scalar_lea.vmem [#allocation2], %s2076_s9  ;;  %p2227_p5 = scmp.ne.s32.totalorder %s2482_s17, %s2226_s28 }
  0x33   : > { %s218_s25 = sshll.u32 %s212_s10, 4  ;;  %p2228_p2 = pneg %p2462_p8  ;;  %s2484_s25 = int_to_ptr.vmem [resolvable:$true] %s218_s25 }
  0x34   : > { %s2231_s11 = scalar_lea.hbm %s2666_s0, 768  ;;  %p2232_p7 = scmp.lt.s32.totalorder %s2482_s17, %s2666_s0 }
  0x35   : > { %p2229_p0 = pnand %p2228_p2, %p2227_p5  ;;  %p2233_p4 = scmp.lt.s32.totalorder %s2231_s11, %s2226_s28 }
  0x37   : > { %p2230_p3 = pneg %p2229_p0  ;;  %p2234_p11 = por %p2233_p4, %p2232_p7 }
  0x39   : > { %p2235_p12 = pnand %p2234_p11, %p2230_p3 }
  0x3b   : > { %2238 = shalt.err (!%p2235_p12)
}
  0x3c   : > { %s2239_s8 = scalar_lea.vmem %s2484_s25, 384  ;;  %s2328_s9 = smov [#allocation2]  }
  0x3d   : > { %p2240_p9 = scmp.ne.s32.totalorder %s2484_s25, %s2239_s8  ;;  %s2244_s10 = sshll.u32 %s2328_s9, 4  ;;  %s2245_s10 = int_to_ptr.vmem [resolvable:$false] %s2244_s10 }
  0x3e   : > { %s2246_s14 = scalar_lea.vmem %s2245_s10, 768  ;;  %p2247_p5 = scmp.lt.s32.totalorder %s2484_s25, %s2245_s10 }
  0x3f   : > { %p2242_p10 = pnand %p2240_p9, %p2228_p2  ;;  %p2248_p0 = scmp.lt.s32.totalorder %s2246_s14, %s2239_s8 }
  0x41   : > { %p2243_p1 = pneg %p2242_p10  ;;  %p2249_p6 = por %p2248_p0, %p2247_p5 }
  0x43   : > { %p2250_p13 = pnand %p2249_p6, %p2243_p1 }
  0x45   : > { %2253 = shalt.err (!%p2250_p13)
}
  0x46   : > { %s2329_s28 = smov 256   ;;  %s2684_s12 = smov 128  }
  0x47   : > { %2100 = dma.hbm_to_vmem [thread:$0]  (!%p2462_p8), %s2482_s17, 384, %s2484_s25, %s2486_s26, %s2329_s28, %s2684_s12, %s2327_s15  }
  0x48   : > { %p2685_p2 = scmp.ne.s32.totalorder %s2681_s7, 0 }
  0x49   : > { %s2512_s11 = sand.u32 (!%p2685_p2), 1, %s2314_s19   ;;  %p2686_p6 = scmp.ne.s32.totalorder (!%p2685_p2), %s2678_s29, 0 }
  0x4a   : > { %230 = sbr.rel (%p2685_p2) target bundleno = 1730 (0x6c2), region = 40  ;;  %s233_s16 = scalar_lea.sflag (!%p2685_p2), [#allocation3], %s2512_s11 }
  0x4b   : > { %s2077_s13 = smul.u32 (!%p2685_p2), 24, %s2512_s11 }
  0x4d   : > { %s2516_s8 = scalar_lea.vmem (!%p2685_p2), [#allocation2], %s2077_s13 }
  0x4f   : > { %2297 = dma.done.wait (%p2686_p6), %s233_s16, 384  }
  0x50   : > { %2299 = vsyncadd (%p2686_p6), %s233_s16, 4294966912  ;;  %p2687_p13 = scmp.eq.s32.totalorder %s2392_s22, 0 }
  0x52   : > { %2301 = dma.done.wait (%p2687_p13), [#allocation6], 2048   ;;  %p2688_p8 = pmov %p2687_p13 }
  0x53   : > { %v2330_v0 = vmov 0.0   ;;  %vm2331_vm0 = vmmov 0   ;;  %v277_v1 = vld [vmem:[#allocation5 + $0x18] sm:$0xff]  ;;  %v276_v2 = vld [vmem:[#allocation5 + $0x10] sm:$0xff]  ;;  %v275_v4 = vld [vmem:[#allocation5 + $0x8] sm:$0xff]  ;;  %vm307_vm1 = vcmask 261120  }
  0x54   : > { %2303 = vsyncadd (%p2688_p8), [#allocation6], 4294965248  ;;  %1992 = vmatprep.subr.mxu0 %v2330_v0  ;;  %2000 = vmatprep.mubr.msk.f32.mxu0 %vm2331_vm0, %v2330_v0  ;;  %v281_v3 = vld [vmem:[#allocation5 + $0x38] sm:$0xff]  ;;  %v280_v5 = vld [vmem:[#allocation5 + $0x30] sm:$0xff]  ;;  %s2332_s17 = smov 104   ;;  %s2333_s25 = smov 120  }
  0x55   : > { %2003 = vmatprep.subr.mxu1 %v2330_v0  ;;  %2011 = vmatprep.mubr.msk.f32.mxu1 %vm2331_vm0, %v2330_v0  ;;  %v279_v6 = vld [vmem:[#allocation5 + $0x28] sm:$0xff]  ;;  %v274_v7 = vld [vmem:[#allocation5] sm:$0xff]  ;;  %v272_v10 = vld [vmem:[%s2516_s8 + $0x8] sm:$0xff]  ;;  %s2334_s26 = smov 112   ;;  %vm682_vm2 = vcmask 64512   ;;  %s2337_s14 = smov 16  }
  0x56   : > { %1993 = vmatpush3.msra.mxu0 %v277_v1  ;;  %2004 = vmatpush3.msra.mxu1 %v281_v3  ;;  %v271_v8 = vld [vmem:[%s2516_s8] sm:$0xff]  ;;  %v278_v9 = vld [vmem:[#allocation5 + $0x20] sm:$0xff]  ;;  %v285_v21 = vld [vmem:[#allocation5 + $0x58] sm:$0xff]  ;;  %s2338_s28 = smov 8   ;;  %s2339_s12 = smov 24   ;;  %vm1728_vm3 = vcmask 130048  }
  0x57   : > { %1994 = vmatprep.subr.mxu0 %v2330_v0  ;;  %2005 = vmatprep.subr.mxu1 %v2330_v0  ;;  %v1930_v11 = vld [vmem:[%s2668_s2] ss:$0 sm:$0xff]  ;;  %v1931_v16 = vld [vmem:[%s2668_s2 + $0x1] ss:$0 sm:$0xff]  ;;  %v283_v24 = vld [vmem:[#allocation5 + $0x48] sm:$0xff]  ;;  %vm1730_vm4 = vcmask 195584  }
  0x58   : > { %1995 = vmatpush3.msra.mxu0 %v276_v2  ;;  %2006 = vmatpush3.msra.mxu1 %v280_v5  ;;  %v284_v22 = vld [vmem:[#allocation5 + $0x50] sm:$0xff]  ;;  %v282_v25 = vld [vmem:[#allocation5 + $0x40] sm:$0xff]  ;;  %s1929_s13 = sshll.u32 %s2512_s11, 3  ;;  %s1953_s29 = sshll.u32 %s2392_s22, 7 }
  0x59   : > { %1996 = vmatprep.subr.mxu0 %v2330_v0  ;;  %2007 = vmatprep.subr.mxu1 %v2330_v0  ;;  %v273_v26 = vld [vmem:[%s2516_s8 + $0x10] sm:$0xff]  ;;  %v1932_v52 = vld [vmem:[%s2668_s2 + $0x2] ss:$0 sm:$0xff]  ;;  %s270_s7 = scalar_lea.vmem [#allocation8], %s1929_s13  ;;  %p2689_p7 = scmp.ne.s32.totalorder %s2679_s30, 0 }
  0x5a   : > { %1997 = vmatpush3.msra.mxu0 %v275_v4  ;;  %2008 = vmatpush3.msra.mxu1 %v279_v6  ;;  %s1831_s15 = sshll.u32 %s270_s7, 4  ;;  %s2340_s22 = smov [#allocation8]   ;;  %s1832_s15 = int_to_ptr.vmem [resolvable:$true] %s1831_s15 }
  0x5b   : > { %1998 = vmatprep.subr.mxu0 %v2330_v0  ;;  %2009 = vmatprep.subr.mxu1 %v2330_v0  ;;  %s2254_s9 = scalar_lea.vmem %s1832_s15, 128  ;;  %s2258_s10 = sshll.u32 %s2340_s22, 4  ;;  %s2259_s10 = int_to_ptr.vmem [resolvable:$false] %s2258_s10 }
  0x5c   : > { %1999 = vmatpush3.msra.mxu0 %v274_v7  ;;  %2010 = vmatpush3.msra.mxu1 %v278_v9  ;;  %p2255_p3 = scmp.ne.s32.totalorder %s1832_s15, %s2254_s9  ;;  %p2261_p12 = scmp.lt.s32.totalorder %s1832_s15, %s2259_s10 }
  0x5d   : > { %2001 = vmatmul.mubr.msk.f32.vlgmr.msra.gmra.mxu0 %vm307_vm1, %v271_v8  ;;  %2012 = vmatmul.mubr.msk.f32.vlgmr.msra.gmra.mxu1 %vm307_vm1, %v272_v10 }
  0x5e   : > { %2025 = vmatprep.subr.mxu1 %v2330_v0  ;;  %2027 = vmatprep.mubr.msk.f32.mxu1 %vm2331_vm0, %v2330_v0  ;;  %p2256_p4 = pnand %p2255_p3, %p2689_p7 }
  0x5f   : > { %2014 = vmatprep.subr.mxu0 %v2330_v0  ;;  %2022 = vmatprep.mubr.msk.f32.mxu0 %vm2331_vm0, %v2330_v0 }
  0x60   : > { %2015 = vmatpush3.msra.mxu0 %v285_v21  ;;  %p2257_p11 = pneg %p2256_p4 }
  0x61   : > { %2016 = vmatprep.subr.mxu0 %v2330_v0 }
  0x62   : > { %2017 = vmatpush3.msra.mxu0 %v284_v22 }
  0x63   : > { %2018 = vmatprep.subr.mxu0 %v2330_v0 }
  0x64   : > { %2019 = vmatpush3.msra.mxu0 %v283_v24 }
  0x65   : > { %2020 = vmatprep.subr.mxu0 %v2330_v0 }
  0x66   : > { %2021 = vmatpush3.msra.mxu0 %v282_v25 }
  0x67   : > { %2023 = vmatmul.mubr.msk.f32.vlgmr.msra.gmra.mxu0 %vm307_vm1, %v273_v26  ;;  %2045 = vmatprep.subr.mxu0 %v2330_v0 }
  0x68   : > { %2047 = vmatprep.mubr.msk.f32.mxu0 %vm2331_vm0, %v2330_v0 }
 0x11d   : > { %v377_v12 = vpop.f32.mrf.mxu0  ;;  %v450_v14 = vpop.f32.mrf.mxu1 }
 0x11e   : > { %v378_v13 = vadd.f32 %v1930_v11, %v377_v12  ;;  %v451_v18 = vadd.f32 %v1931_v16, %v450_v14 }
 0x11f   : > { %v2002_v15 = vpop.f32.mrf.mxu0  ;;  %v2013_v17 = vpop.f32.mrf.mxu1 }
 0x120   : > { %534 = vrot.lane.b32.xlu1 %v378_v13, %s2332_s17  ;;  %528 = vrot.lane.b32.xlu0 %v378_v13, %s2333_s25 }
 0x124   : > { %531 = vrot.lane.b32.xlu0 %v378_v13, %s2334_s26  ;;  %538 = vrot.lane.b32.xlu1 %v451_v18, %s2333_s25 }
 0x127   : > { %v523_v34 = vpop.f32.mrf.mxu0 }
 0x128   : > { %540 = vrot.lane.b32.xlu0 %v451_v18, %s2334_s26  ;;  %542 = vrot.lane.b32.xlu1 %v451_v18, %s2332_s17  ;;  %v524_v53 = vadd.f32 %v1932_v52, %v523_v34 }
 0x129   : > { %v2024_v35 = vpop.f32.mrf.mxu0 }
 0x146   : > { %554 = vxpose.xlu0.b32.start.end [1/1] (short) (narrow) %v378_v13, 8 }
 0x192   : > { %v529_v19 = vpop.permute.xlu0 %528  ;;  %v535_v23 = vpop.permute.xlu1 %534 }
 0x193   : > { %586 = vxpose.xlu1.b32.start.end [1/1] (short) (narrow) %v529_v19, 8 }
 0x196   : > { %v532_v20 = vpop.permute.xlu0 %531  ;;  %v539_v29 = vpop.permute.xlu1 %538 }
 0x197   : > { %618 = vxpose.xlu0.b32.start.end [1/1] (short) (narrow) %v532_v20, 8 }
 0x19a   : > { %v541_v27 = vpop.permute.xlu0 %540  ;;  %v543_v30 = vpop.permute.xlu1 %542 }
 0x19b   : > { %650 = vxpose.xlu0.b32.start.end [1/1] (short) (narrow) %v535_v23, 8 }
 0x1c2   : > { %v570_v28 = vpop.trf.xlu0 }
 0x1c3   : > { %2026 = vmatpush3.msra.mxu1 %v570_v28 }
 0x1c4   : > { %2028 = vmatmul.mubr.msk.f32.vlgmr.msra.gmra.mxu1 %vm682_vm2, %v451_v18  ;;  %2030 = vmatprep.subr.mxu1 %v2330_v0 }
 0x1c5   : > { %2032 = vmatprep.mubr.msk.f32.mxu1 %vm2331_vm0, %v2330_v0 }
 0x20f   : > { %v602_v31 = vpop.trf.xlu1 }
 0x210   : > { %2031 = vmatpush3.msra.mxu1 %v602_v31 }
 0x211   : > { %2033 = vmatmul.mubr.msk.f32.vlgmr.msra.gmra.mxu1 %vm682_vm2, %v539_v29  ;;  %2035 = vmatprep.subr.mxu1 %v2330_v0 }
 0x212   : > { %2037 = vmatprep.mubr.msk.f32.mxu1 %vm2331_vm0, %v2330_v0 }
 0x213   : > { %v634_v32 = vpop.trf.xlu0 }
 0x214   : > { %2036 = vmatpush3.msra.mxu1 %v634_v32 }
 0x215   : > { %2038 = vmatmul.mubr.msk.f32.vlgmr.msra.gmra.mxu1 %vm682_vm2, %v541_v27  ;;  %2040 = vmatprep.subr.mxu1 %v2330_v0 }
 0x216   : > { %2042 = vmatprep.mubr.msk.f32.mxu1 %vm2331_vm0, %v2330_v0 }
 0x217   : > { %v666_v33 = vpop.trf.xlu0 }
 0x218   : > { %2041 = vmatpush3.msra.mxu1 %v666_v33 }
 0x219   : > { %2043 = vmatmul.mubr.msk.f32.vlgmr.msra.gmra.mxu1 %vm682_vm2, %v543_v30  ;;  %2050 = vmatprep.subr.mxu1 %v2330_v0 }
 0x21a   : > { %2052 = vmatprep.mubr.msk.f32.mxu1 %vm2331_vm0, %v2330_v0 }
 0x284   : > { %v751_v36 = vpop.f32.mrf.mxu1 }
 0x285   : > { %v971_v37 = vmul.f32 0.35355338, %v751_v36 }
 0x286   : > { %v2029_v38 = vpop.f32.mrf.mxu1 }
 0x287   : > { %v975_v39 = vsel %vm682_vm2, %v971_v37, -inf  ;;  %v1735_v38 = vld [vmem:[#allocation7 + $0x18] sm:$0xff] }
 0x288   : > { %976 = vmax.xlane.f32.xlu0 %v975_v39  ;;  %v2335_v39 = vmov 1983009808  }
 0x2d1   : > { %v823_v40 = vpop.f32.mrf.mxu1 }
 0x2d2   : > { %v972_v41 = vmul.f32 0.35355338, %v823_v40  ;;  %v1582_v40 = vunpack.c.l.s4 %v2335_v39 }
 0x2d3   : > { %v2034_v42 = vpop.f32.mrf.mxu1 }
 0x2d4   : > { %v978_v43 = vsel %vm682_vm2, %v972_v41, -inf }
 0x2d5   : > { %979 = vmax.xlane.f32.xlu1 %v978_v43  ;;  %v895_v44 = vpop.f32.mrf.mxu1  ;;  %v2336_v43 = vmov 1934713408  }
 0x2d6   : > { %v973_v45 = vmul.f32 0.35355338, %v895_v44  ;;  %v1614_v44 = vunpack.c.l.s4 %v2336_v43 }
 0x2d7   : > { %v2039_v46 = vpop.f32.mrf.mxu1 }
 0x2d8   : > { %v981_v47 = vsel %vm682_vm2, %v973_v45, -inf }
 0x2d9   : > { %982 = vmax.xlane.f32.xlu1 %v981_v47  ;;  %v967_v48 = vpop.f32.mrf.mxu1 }
 0x2da   : > { %v974_v49 = vmul.f32 0.35355338, %v967_v48 }
 0x2db   : > { %v2044_v50 = vpop.f32.mrf.mxu1 }
 0x2dc   : > { %v984_v51 = vsel %vm682_vm2, %v974_v49, -inf }
 0x2dd   : > { %985 = vmax.xlane.f32.xlu0 %v984_v51 }
 0x2ea   : > { %545 = vrot.lane.b32.xlu1 %v524_v53, %s2333_s25  ;;  %s2628_s25 = scalar_lea.hbm %s2671_s5, %s1953_s29 }
 0x2ee   : > { %551 = vrot.lane.b32.xlu1 %v524_v53, %s2332_s17 }
 0x2f3   : > { %548 = vrot.lane.b32.xlu0 %v524_v53, %s2334_s26  ;;  %s1818_s26 = scalar_lea.sflag [#allocation4], %s2512_s11 }
 0x311   : > { %v977_v54 = vpop.xlane.xlu0 %976 }
 0x312   : > { %v987_v55 = vsub.f32 %v971_v37, %v977_v54 }
 0x314   : > { %v991_v56 = vmul.f32 1.442695, %v987_v55 }
 0x316   : > { %2158 = vpow2.f32 %v991_v56 }
 0x323   : > { %v2159_v57 = vpop.eup %2158 }
 0x324   : > { %v999_v58 = vsel %vm682_vm2, %v2159_v57, 0.0 }
 0x325   : > { %1000 = vadd.xlane.f32.xlu0 %v999_v58 }
 0x35e   : > { %v980_v59 = vpop.xlane.xlu1 %979 }
 0x35f   : > { %v988_v60 = vsub.f32 %v972_v41, %v980_v59  ;;  %v1584_v41 = vlaneseq }
 0x361   : > { %v993_v61 = vmul.f32 1.442695, %v988_v60  ;;  %v1585_v46 = vshrl.u32 %v1584_v41, 7 }
 0x362   : > { %v983_v62 = vpop.xlane.xlu1 %982 }
 0x363   : > { %2160 = vpow2.f32 %v993_v61  ;;  %v989_v63 = vsub.f32 %v973_v45, %v983_v62  ;;  %v1583_v45 = vunpack.c.0.s8 %v1582_v40 }
 0x365   : > { %v995_v1 = vmul.f32 1.442695, %v989_v63  ;;  %v1586_v50 = vsub.s32 %v1583_v45, %v1585_v46 }
 0x366   : > { %v986_v2 = vpop.xlane.xlu0 %985  ;;  %v546_v11 = vpop.permute.xlu1 %545 }
 0x367   : > { %2162 = vpow2.f32 %v995_v1  ;;  %v990_v3 = vsub.f32 %v974_v49, %v986_v2  ;;  %v1615_v49 = vunpack.c.0.s8 %v1614_v44  ;;  %v1734_v2 = vld [vmem:[#allocation7 + $0x10] sm:$0xff] }
 0x369   : > { %v997_v4 = vmul.f32 1.442695, %v990_v3  ;;  %v1618_v56 = vsub.s32 %v1615_v49, %v1585_v46  ;;  %v1733_v3 = vld [vmem:[#allocation7 + $0x8] sm:$0xff] }
 0x36a   : > { %v549_v12 = vpop.permute.xlu0 %548  ;;  %v552_v13 = vpop.permute.xlu1 %551 }
 0x36b   : > { %2164 = vpow2.f32 %v997_v4 }
 0x370   : > { %v2161_v5 = vpop.eup %2160 }
 0x371   : > { %v1002_v6 = vsel %vm682_vm2, %v2161_v5, 0.0 }
 0x372   : > { %1003 = vadd.xlane.f32.xlu0 %v1002_v6 }
 0x374   : > { %v2163_v7 = vpop.eup %2162 }
 0x375   : > { %v1005_v8 = vsel %vm682_vm2, %v2163_v7, 0.0 }
 0x376   : > { %1006 = vadd.xlane.f32.xlu1 %v1005_v8 }
 0x378   : > { %v2165_v9 = vpop.eup %2164 }
 0x379   : > { %v1008_v10 = vsel %vm682_vm2, %v2165_v9, 0.0 }
 0x37a   : > { %1009 = vadd.xlane.f32.xlu0 %v1008_v10 }
 0x3a7   : > { %1051 = vxpose.xlu0.b32.start.end [1/1] (short) (narrow) %v546_v11, 8 }
 0x3a9   : > { %1019 = vxpose.xlu1.b32.start.end [1/1] (short) (narrow) %v524_v53, 8 }
 0x3ab   : > { %1115 = vxpose.xlu0.b32.start.end [1/1] (short) (narrow) %v552_v13, 8 }
 0x3ad   : > { %1083 = vxpose.xlu1.b32.start.end [1/1] (short) (narrow) %v549_v12, 8  ;;  %v1732_v12 = vld [vmem:[#allocation7] sm:$0xff] }
 0x3ae   : > { %v1001_v14 = vpop.xlane.xlu0 %1000 }
 0x3af   : > { %2166 = vrcp.f32 %v1001_v14 }
 0x3bc   : > { %v2167_v15 = vpop.eup %2166 }
 0x3bd   : > { %v1015_v16 = vmul.f32 %v2167_v15, %v2159_v57 }
 0x3bf   : > { %2046 = vmatpush3.xpose.msk.msra.mxu0 %vm682_vm2, %v1015_v16 }
 0x3c0   : > { %2055 = vmatprep.subr.mxu0 %v2330_v0 }
 0x3fb   : > { %v1004_v17 = vpop.xlane.xlu0 %1003 }
 0x3fc   : > { %2168 = vrcp.f32 %v1004_v17 }
 0x3ff   : > { %v1007_v21 = vpop.xlane.xlu1 %1006 }
 0x403   : > { %v1010_v20 = vpop.xlane.xlu0 %1009 }
 0x404   : > { %2170 = vrcp.f32 %v1010_v20 }
 0x405   : > { %2172 = vrcp.f32 %v1007_v21 }
 0x409   : > { %v2169_v18 = vpop.eup %2168 }
 0x40a   : > { %v1016_v19 = vmul.f32 %v2169_v18, %v2161_v5 }
 0x40c   : > { %2051 = vmatpush3.xpose.msk.msra.mxu1 %vm682_vm2, %v1016_v19 }
 0x40d   : > { %2060 = vmatprep.subr.mxu1 %v2330_v0 }
 0x411   : > { %v2171_v22 = vpop.eup %2170 }
 0x412   : > { %v2173_v23 = vpop.eup %2172  ;;  %v1018_v25 = vmul.f32 %v2171_v22, %v2165_v9 }
 0x413   : > { %v1017_v27 = vmul.f32 %v2173_v23, %v2163_v7 }
 0x423   : > { %v1067_v24 = vpop.trf.xlu0 }
 0x424   : > { %2053 = vmatmul.mubr.msk.f32.vlgmr.msra.gmra.mxu1 %vm682_vm2, %v1067_v24 }
 0x425   : > { %2061 = vmatpush3.xpose.msk.msra.mxu1 %vm682_vm2, %v1018_v25  ;;  %v1035_v26 = vpop.trf.xlu1  ;;  %2062 = vmatprep.mubr.msk.f32.mxu1 %vm2331_vm0, %v2330_v0 }
 0x426   : > { %2048 = vmatmul.mubr.msk.f32.vlgmr.msra.gmra.mxu0 %vm682_vm2, %v1035_v26 }
 0x427   : > { %2056 = vmatpush3.xpose.msk.msra.mxu0 %vm682_vm2, %v1017_v27  ;;  %v1131_v28 = vpop.trf.xlu0  ;;  %2057 = vmatprep.mubr.msk.f32.mxu0 %vm2331_vm0, %v2330_v0 }
 0x428   : > { %2063 = vmatmul.mubr.msk.f32.vlgmr.msra.gmra.mxu1 %vm682_vm2, %v1131_v28  ;;  %2065 = vmatprep.subr.mxu0 %v2330_v0 }
 0x429   : > { %v1099_v29 = vpop.trf.xlu1 }
 0x42a   : > { %2058 = vmatmul.mubr.msk.f32.vlgmr.msra.gmra.mxu0 %vm682_vm2, %v1099_v29 }
 0x42b   : > { %2073 = vmatprep.mubr.msk.f32.mxu0 %vm2331_vm0, %v2330_v0  ;;  %2066 = vmatpush3.msra.mxu0 %v1735_v38 }
 0x42c   : > { %2067 = vmatprep.subr.mxu0 %v2330_v0 }
 0x42d   : > { %2068 = vmatpush3.msra.mxu0 %v1734_v2 }
 0x42e   : > { %2069 = vmatprep.subr.mxu0 %v2330_v0 }
 0x42f   : > { %2070 = vmatpush3.msra.mxu0 %v1733_v3 }
 0x430   : > { %2071 = vmatprep.subr.mxu0 %v2330_v0 }
 0x431   : > { %2072 = vmatpush3.msra.mxu0 %v1732_v12 }
 0x4e4   : > { %v1295_v30 = vpop.f32.mrf.mxu1 }
 0x4e5   : > { %1483 = vxpose.xlu0.b32.start.end [1/1] (short) (narrow) %v1295_v30, 8 }
 0x4e6   : > { %v1219_v31 = vpop.f32.mrf.mxu0  ;;  %v2054_v32 = vpop.f32.mrf.mxu1 }
 0x4e7   : > { %1451 = vxpose.xlu1.b32.start.end [1/1] (short) (narrow) %v1219_v31, 8 }
 0x4e8   : > { %v2049_v33 = vpop.f32.mrf.mxu0  ;;  %v1447_v34 = vpop.f32.mrf.mxu1 }
 0x4e9   : > { %1547 = vxpose.xlu0.b32.start.end [1/1] (short) (narrow) %v1447_v34, 8  ;;  %v1950_v34 = vld [vmem:[%s2670_s4] ss:$0 sm:$0xff] }
 0x4ea   : > { %v1371_v35 = vpop.f32.mrf.mxu0  ;;  %v2064_v36 = vpop.f32.mrf.mxu1 }
 0x4eb   : > { %1515 = vxpose.xlu1.b32.start.end [1/1] (short) (narrow) %v1371_v35, 8 }
 0x4ec   : > { %v2059_v37 = vpop.f32.mrf.mxu0 }
 0x561   : > { %v1499_v42 = vpop.trf.xlu0 }
 0x563   : > { %v1467_v47 = vpop.trf.xlu1 }
 0x565   : > { %v1563_v48 = vpop.trf.xlu0 }
 0x566   : > { %v1595_v51 = vcombine.low %v1499_v42, %v1563_v48  ;;  %v1596_v52 = vcombine.high %v1499_v42, %v1563_v48 }
 0x567   : > { %v1531_v53 = vpop.trf.xlu1 }
 0x568   : > { %v1579_v54 = vcombine.low %v1467_v47, %v1531_v53  ;;  %v1580_v55 = vcombine.high %v1467_v47, %v1531_v53  ;;  %v1603_v57 = vrot.slane %v1595_v51, %v1586_v50  ;;  %v1610_v58 = vrot.slane %v1596_v52, %v1586_v50 }
 0x56a   : > { %v1587_v59 = vrot.slane %v1579_v54, %v1586_v50  ;;  %v1594_v60 = vrot.slane %v1580_v55, %v1586_v50 }
 0x56c   : > { %v1611_v61 = vcombine.low %v1587_v59, %v1603_v57  ;;  %v1612_v62 = vcombine.high %v1587_v59, %v1603_v57  ;;  %v1627_v63 = vcombine.low %v1594_v60, %v1610_v58  ;;  %v1628_v1 = vcombine.high %v1594_v60, %v1610_v58 }
 0x56e   : > { %v1619_v4 = vrot.slane %v1611_v61, %v1618_v56  ;;  %v1626_v5 = vrot.slane %v1612_v62, %v1618_v56  ;;  %v1635_v6 = vrot.slane %v1627_v63, %v1618_v56  ;;  %v1642_v7 = vrot.slane %v1628_v1, %v1618_v56 }
 0x570   : > { %v1647_v8 = vcombine.low %v1619_v4, %v1626_v5  ;;  %v1948_v9 = vcombine.high %v1619_v4, %v1626_v5  ;;  %v1663_v10 = vcombine.low %v1635_v6, %v1642_v7  ;;  %v1949_v11 = vcombine.high %v1635_v6, %v1642_v7 }
 0x572   : > { %v1654_v13 = vrot.slane %v1647_v8, %v1586_v50  ;;  %v1662_v14 = vrot.slane %v1948_v9, %v1586_v50  ;;  %v1670_v15 = vrot.slane %v1663_v10, %v1586_v50  ;;  %v1678_v16 = vrot.slane %v1949_v11, %v1586_v50 }
 0x574   : > { %v1680_v17 = vcombine.high %v1654_v13, %v1662_v14  ;;  %v1696_v18 = vcombine.high %v1670_v15, %v1678_v16  ;;  %v1679_v19 = vcombine.low %v1654_v13, %v1662_v14  ;;  %v1695_v20 = vcombine.low %v1670_v15, %v1678_v16 }
 0x576   : > { %v1694_v21 = vrot.slane %v1680_v17, %v1618_v56  ;;  %v1710_v22 = vrot.slane %v1696_v18, %v1618_v56  ;;  %v1687_v23 = vrot.slane %v1679_v19, %v1618_v56  ;;  %v1703_v24 = vrot.slane %v1695_v20, %v1618_v56 }
 0x578   : > { %v1713_v25 = vcombine.low %v1694_v21, %v1710_v22  ;;  %v1712_v26 = vcombine.high %v1687_v23, %v1703_v24  ;;  %v1711_v27 = vcombine.low %v1687_v23, %v1703_v24  ;;  %v1714_v0 = vcombine.high %v1694_v21, %v1710_v22 }
 0x57a   : > { %1720 = vrot.lane.b32.xlu0 %v1713_v25, %s2337_s14  ;;  %1716 = vrot.lane.b32.xlu1 %v1712_v26, %s2338_s28  ;;  %s2260_s14 = scalar_lea.vmem %s2259_s10, 256 }
 0x57b   : > { %p2262_p9 = scmp.lt.s32.totalorder %s2260_s14, %s2254_s9 }
 0x57d   : > { %p2263_p10 = por %p2262_p9, %p2261_p12 }
 0x57e   : > { %1724 = vrot.lane.b32.xlu1 %v1714_v0, %s2339_s12 }
 0x57f   : > { %p2264_p1 = pnand %p2263_p10, %p2257_p11 }
 0x5ec   : > { %v1717_v28 = vpop.permute.xlu1 %1716  ;;  %v1721_v29 = vpop.permute.xlu0 %1720 }
 0x5ed   : > { %v1727_v30 = vsel %vm682_vm2, %v1711_v27, %v1717_v28 }
 0x5ee   : > { %v1729_v32 = vsel %vm1728_vm3, %v1727_v30, %v1721_v29 }
 0x5f0   : > { %v1725_v31 = vpop.permute.xlu1 %1724 }
 0x5f1   : > { %v1731_v33 = vsel %vm1730_vm4, %v1729_v32, %v1725_v31 }
 0x5f2   : > { %2074 = vmatmul.mubr.msk.f32.vlgmr.msra.gmra.mxu0 %vm307_vm1, %v1731_v33 }
 0x6b2   : > { %v1812_v35 = vpop.f32.mrf.mxu0 }
 0x6b3   : > { %v1813_v36 = vadd.f32 %v1950_v34, %v1812_v35 }
 0x6b4   : > { %v2075_v37 = vpop.f32.mrf.mxu0 }
 0x6b5   : > { %1816 = vst.msk [vmem:[%s270_s7] sm:$0xff] %vm307_vm1, %v1813_v36 }
 0x6b6   : > { %2267 = shalt.err (!%p2264_p1)
}
 0x6b7   : > { %s2268_s28 = scalar_lea.hbm %s2628_s25, 128  ;;  %s2272_s13 = scalar_lea.hbm %s2671_s5, 256 }
 0x6b8   : > { %p2269_p5 = scmp.ne.s32.totalorder %s2628_s25, %s2268_s28  ;;  %p2273_p6 = scmp.lt.s32.totalorder %s2628_s25, %s2671_s5 }
 0x6b9   : > { %p2274_p13 = scmp.lt.s32.totalorder %s2272_s13, %s2268_s28 }
 0x6ba   : > { %p2270_p0 = pnand %p2269_p5, %p2689_p7 }
 0x6bb   : > { %p2275_p8 = por %p2274_p13, %p2273_p6 }
 0x6bc   : > { %p2271_p2 = pneg %p2270_p0 }
 0x6be   : > { %p2276_p3 = pnand %p2275_p8, %p2271_p2 }
 0x6c0   : > { %2279 = shalt.err (!%p2276_p3)
}
 0x6c1   : > { %2088 = dma.vmem_to_hbm [thread:$0]  (%p2689_p7), %s1832_s15, 128, %s2628_s25, %s1818_s26  }
 0x6c2 PF: > { %s1843_s29 = sand.u32 1, %s2310_s18   ;;  %p2690_p4 = scmp.ne.s32.totalorder %s2680_s6, 0 }
 0x6c3   : > { %p2691_p11 = scmp.ge.s32.totalorder %s2322_s21, 2  ;;  %s1844_s7 = scalar_lea.sflag [#allocation4], %s1843_s29 }
 0x6c5   : > { %p2102_p12 = pnand %p2691_p11, %p2690_p4 }
 0x6c7   : > { %p2103_p9 = pneg %p2102_p12 }
 0x6c9   : > { %2305 = dma.done.wait (%p2103_p9), %s1844_s7, 128  }
 0x6ca   : > { %2307 = vsyncadd (%p2103_p9), %s1844_s7, 4294967168  ;;  %p19_p10 = scmp.ge.s32.totalorder %s2396_s24, 4   ;;  %s2692_s18 = smov %s2314_s19 }
 0x6cb   : > { %s2693_s19 = smov %s2318_s20  ;;  %s2694_s20 = smov %s2408_s27 }
 0x6cc   : > { %s2695_s21 = smov %s2396_s24  ;;  %21 = sbr.rel (!%p19_p10) target bundleno = 6 (0x6), region = 93 }
 0x6d1   :  { %1849 = vsyncpa [#allocation3], 1 }
 0x6d2   :  { %1851 = vsyncpa [#allocation3 + $0x1], 1 }
 0x6d3   :  { %1852 = vsyncpa [#allocation6], 1 }
 0x6d4   :  { %1853 = vsyncpa [#allocation4], 1 }
 0x6d5   :  { %1855 = vsyncpa [#allocation4 + $0x1], 1 }

</bundles_post_ra>
